<compile_context>
chip_gen: v7x
topology: tpu7x:2x2x1
jax: 0.10.0
libtpu: 0.0.40
codegen_flags: <defaults>
</compile_context>

<pallas_src>
import jax
import jax.numpy as jnp
from jax.experimental import pallas as pl
from jax.experimental.pallas import tpu as pltpu
import numpy as np


def attention_kernel(wT_ref, b_ref, x_ref, applied_ref, weights_ref, acc_ref):
    """One (batch-tile, sequence-tile) grid step.

    wT_ref:      (H, H)        pre-transposed Linear weight (W^T)
    b_ref:       (1, H)        Linear bias
    x_ref:       (BT, TS, H)   lstm_output tile
    applied_ref: (BT, H)       output: attn_applied tile (resident across seq axis)
    weights_ref: (BT, TS, H)   output: attn_weights tile
    acc_ref:     (BT, H) f32   VMEM accumulator scratch
    """
    s_step = pl.program_id(1)

    @pl.when(s_step == 0)
    def _():
        acc_ref[...] = jnp.zeros_like(acc_ref)

    bt, ts, h = x_ref.shape
    x3 = x_ref[...]                                     # (BT, TS, H)
    x2 = x3.reshape(bt * ts, h)                         # tall GEMM LHS (BT*TS, H)

    # scores = x @ W^T + b  -- single MXU matmul over all BT*TS rows.
    scores = jnp.dot(x2, wT_ref[...], preferred_element_type=jnp.float32)
    scores = scores + b_ref[...]

    # Softmax over the hidden (last) axis == PyTorch dim=2.
    m = jnp.max(scores, axis=-1, keepdims=True)
    e = jnp.exp(scores - m)                             # EUP
    denom = jnp.sum(e, axis=-1, keepdims=True)
    # EUP approximate reciprocal + one Newton-Raphson refinement (2 cheap VPU
    # ops) -> near-exact f32 while keeping the divide off the VALU.
    inv = pl.reciprocal(denom, approx=True)
    inv = inv * (2.0 - denom * inv)
    p = e * inv                                         # (BT*TS, H)

    # NOTE: for H < 128 this store is lane-masked (vst.msk).  A wrapper-side
    # flat (B, S*H) layout would be lane-dense but needs a minor-dim-changing
    # in-kernel relayout; left as-is since realistic H is a multiple of 128.
    weights_ref[...] = p.reshape(bt, ts, h).astype(weights_ref.dtype)

    # bmm(p^T, x).sum(dim=1)  ==  sum_s (sum_h p[s, :]) * x[s, :].
    # The softmax row sums are already available from the normalisation:
    #   sum_h p = denom * inv   (no second cross-lane XLU reduction needed).
    row_sum = (denom * inv).reshape(bt, ts, 1)          # (BT, TS, 1)
    acc_ref[...] += jnp.sum(row_sum * x3.astype(jnp.float32), axis=1)

    @pl.when(s_step == pl.num_programs(1) - 1)
    def _():
        applied_ref[...] = acc_ref[...].astype(applied_ref.dtype)


def _tile_candidates(n):
    """Legal tile sizes for a dim of length n: n itself, or any multiple of 8
    that divides n (so blocks satisfy the (8, 128) sublane rule)."""
    cands = {n}
    for d in range(8, n, 8):
        if n % d == 0:
            cands.add(d)
    return sorted(cands)


def _pick_tiles(B, S, H, itemsize, max_block_bytes=2 << 20):
    """Pick (BT, TS) so the (BT, TS, H) x-block is as large as possible while
    staying <= ~2 MiB (well past the measured HBM-roofline knee), preferring
    >= 2 steps on the batch ("parallel") axis so both v7x TensorCores are used,
    and >= 2 total grid steps so the DMA pipeline has work to overlap."""
    pairs = [(bt, ts) for bt in _tile_candidates(B) for ts in _tile_candidates(S)]

    def block_bytes(p):
        return p[0] * p[1] * H * itemsize

    fitting = [p for p in pairs if block_bytes(p) <= max_block_bytes]
    if not fitting:
        # Even the minimum legal tile exceeds the budget (huge H): take the
        # smallest one and let vmem_limit_bytes absorb it.
        return min(pairs, key=block_bytes)

    def score(p):
        bt, ts = p
        batch_par = (B // bt) >= 2                      # v7x megacore sharding
        multi_step = (B // bt) * (S // ts) >= 2         # pipeline has >1 step
        return (batch_par, multi_step, block_bytes(p), ts)

    return max(fitting, key=score)


def attention_forward(lstm_output, hidden, weight, bias, *,
                      batch_tile=None, seq_tile=None):
    """JAX wrapper.  `hidden` is accepted for signature fidelity but unused
    (as in the PyTorch module, where hidden[-1] is computed then discarded)."""
    del hidden
    B, S, H = lstm_output.shape
    itemsize = lstm_output.dtype.itemsize
    out_dtype = lstm_output.dtype
    out_itemsize = jnp.dtype(out_dtype).itemsize

    bt_auto, ts_auto = _pick_tiles(B, S, H, itemsize)
    BT = batch_tile if batch_tile is not None else bt_auto
    TS = seq_tile if seq_tile is not None else ts_auto

    # Guard explicit tiles: must divide the dim and be either the full extent
    # or a multiple of 8 (otherwise the (BT, H) / (BT, TS, H) blocks violate
    # the (8, 128) sublane rule and fail to lower).
    for name, t, full in (("batch_tile", BT, B), ("seq_tile", TS, S)):
        if full % t != 0 or not (t == full or t % 8 == 0):
            raise ValueError(
                f"{name}={t} must divide {full} and be the full extent or a "
                f"multiple of 8")

    w_t = weight.T                      # one-time hoisted transpose (HBM side)
    bias2d = bias.reshape(1, H)

    # Explicit VMEM budget: double-buffered x-in / weights-out / applied-out
    # blocks, W^T + bias, the accumulator scratch, plus headroom for the f32
    # intermediates (scores / e / p).  Capped at 32 MiB: within the scoped
    # default on v7x (64 MiB physical) and safely below v5e/v6e's 128 MiB.
    x_blk = BT * TS * H * itemsize
    w_blk = BT * TS * H * out_itemsize
    est = (2 * x_blk + 2 * w_blk + 2 * BT * H * out_itemsize
           + 2 * (H * H + H) * weight.dtype.itemsize
           + BT * H * 4                 # accumulator scratch
           + 4 * BT * TS * H * 4)       # f32 intermediates headroom
    vmem_limit = int(min(32 << 20, max(16 << 20, 2 * est)))

    cost = pl.CostEstimate(
        flops=2 * B * S * H * H + 8 * B * S * H,
        transcendentals=B * S * H,
        bytes_accessed=(B * S * H * itemsize                 # x in
                        + B * S * H * out_itemsize           # weights out
                        + B * H * out_itemsize               # applied out
                        + (H * H + H) * weight.dtype.itemsize),
    )

    applied, weights = pl.pallas_call(
        attention_kernel,
        out_shape=(
            jax.ShapeDtypeStruct((B, H), out_dtype),          # attn_applied
            jax.ShapeDtypeStruct((B, S, H), out_dtype),       # attn_weights
        ),
        grid_spec=pltpu.PrefetchScalarGridSpec(
            num_scalar_prefetch=0,
            grid=(B // BT, S // TS),                  # reduction (seq) axis last
            in_specs=[
                pl.BlockSpec((H, H), lambda i, j: (0, 0)),           # W^T (shared)
                pl.BlockSpec((1, H), lambda i, j: (0, 0)),           # bias (shared)
                pl.BlockSpec((BT, TS, H), lambda i, j: (i, j, 0)),   # x tile
            ],
            out_specs=[
                pl.BlockSpec((BT, H), lambda i, j: (i, 0)),          # resident over j
                pl.BlockSpec((BT, TS, H), lambda i, j: (i, j, 0)),
            ],
            scratch_shapes=[pltpu.VMEM((BT, H), jnp.float32)],
        ),
        compiler_params=pltpu.CompilerParams(
            dimension_semantics=("parallel", "arbitrary"),
            vmem_limit_bytes=vmem_limit),
        cost_estimate=cost,
    )(w_t, bias2d, lstm_output)

    return applied, weights


if __name__ == "__main__":
    def ref_attention(x, w, b):
        # Pure-JAX reference of the literal PyTorch computation.
        scores = jnp.einsum("bsh,oh->bso", x, w) + b
        weights = jax.nn.softmax(scores, axis=2)
        bmm = jnp.einsum("bsh,bsk->bhk", weights, x)      # weights^T @ x
        return jnp.sum(bmm, axis=1), weights

    key = jax.random.PRNGKey(0)

    # --- Case 1: module-sized demo (B=2, S=8, H=32, num_layers=1) ------------
    B, S, H = 2, 8, 32
    num_layers = 1
    k_x, k_h, k_w, k_b, key = jax.random.split(key, 5)
    lstm_output = jax.random.normal(k_x, (B, S, H), dtype=jnp.float32)
    hidden = jax.random.normal(k_h, (num_layers, B, H), dtype=jnp.float32)
    bound = 1.0 / np.sqrt(H)   # deterministic nn.Linear-style init range
    weight = jax.random.uniform(k_w, (H, H), jnp.float32, -bound, bound)
    bias = jax.random.uniform(k_b, (H,), jnp.float32, -bound, bound)

    attn_applied, attn_weights = attention_forward(lstm_output, hidden, weight, bias)
    jax.block_until_ready((attn_applied, attn_weights))

    ref_applied, ref_weights = ref_attention(lstm_output, weight, bias)
    np.testing.assert_allclose(np.asarray(attn_weights), np.asarray(ref_weights),
                               rtol=1e-3, atol=1e-4)
    np.testing.assert_allclose(np.asarray(attn_applied), np.asarray(ref_applied),
                               rtol=1e-3, atol=1e-3)

    # --- Case 2: exercises the 2-D grid / sequence-axis accumulation path ----
    B2, S2, H2 = 16, 64, 32
    k_x2, k_w2, k_b2, key = jax.random.split(key, 4)
    x2 = jax.random.normal(k_x2, (B2, S2, H2), dtype=jnp.float32)
    hid2 = jnp.zeros((1, B2, H2), dtype=jnp.float32)
    bound2 = 1.0 / np.sqrt(H2)
    w2 = jax.random.uniform(k_w2, (H2, H2), jnp.float32, -bound2, bound2)
    b2 = jax.random.uniform(k_b2, (H2,), jnp.float32, -bound2, bound2)

    applied2, weights2 = attention_forward(x2, hid2, w2, b2,
                                           batch_tile=8, seq_tile=32)  # grid (2, 2)
    jax.block_until_ready((applied2, weights2))

    ref_applied2, ref_weights2 = ref_attention(x2, w2, b2)
    np.testing.assert_allclose(np.asarray(weights2), np.asarray(ref_weights2),
                               rtol=1e-3, atol=1e-4)
    np.testing.assert_allclose(np.asarray(applied2), np.asarray(ref_applied2),
                               rtol=1e-3, atol=1e-3)

    print("KERNEL_OK")
</pallas_src>

<mosaic_0001>
module attributes {stable_mosaic.version = 11 : i64} {
  func.func @attention_kernel(%arg0: i32, %arg1: i32, %arg2: memref<32x32xf32, #tpu.memory_space<vmem>>, %arg3: memref<1x32xf32, #tpu.memory_space<vmem>>, %arg4: memref<2x8x32xf32, #tpu.memory_space<vmem>>, %arg5: memref<2x32xf32, #tpu.memory_space<vmem>>, %arg6: memref<2x8x32xf32, #tpu.memory_space<vmem>>, %arg7: memref<2x32xf32, #tpu.memory_space<vmem>>) attributes {dimension_semantics = [#tpu.dimension_semantics<parallel>, #tpu.dimension_semantics<arbitrary>], iteration_bounds = array<i64: 1, 1>, scalar_prefetch = 0 : i64, scratch_operands = 1 : i64, tpu.core_type = #tpu.core_type<tc>, window_params = [{pipeline_mode = #tpu.pipeline_mode<synchronous>, transform_indices = @transform_0, window_bounds = array<i64: 32, 32>}, {pipeline_mode = #tpu.pipeline_mode<synchronous>, transform_indices = @transform_1, window_bounds = array<i64: 1, 32>}, {transform_indices = @transform_2, window_bounds = array<i64: 2, 8, 32>}, {transform_indices = @transform_3, window_bounds = array<i64: 2, 32>}, {transform_indices = @transform_4, window_bounds = array<i64: 2, 8, 32>}]} {
    %c0_i32 = arith.constant 0 : i32
    %0 = arith.cmpi eq, %arg1, %c0_i32 : i32
    %1 = arith.extui %0 : i1 to i32
    %c0_i32_0 = arith.constant 0 : i32
    %2 = arith.cmpi ne, %1, %c0_i32_0 : i32
    scf.if %2 {
      %cst_20 = arith.constant 0.000000e+00 : f32
      %37 = vector.broadcast %cst_20 : f32 to vector<2x32xf32>
      %c0_21 = arith.constant 0 : index
      %c0_22 = arith.constant 0 : index
      %38 = vector.load %arg7[%c0_21, %c0_22] : memref<2x32xf32, #tpu.memory_space<vmem>>, vector<2x32xf32>
      tpu.vector_store %arg7[%c0_21, %c0_22], %37 {strides = array<i32>} : memref<2x32xf32, #tpu.memory_space<vmem>>, vector<2x32xf32>,
    } else {
    }
    %c0 = arith.constant 0 : index
    %c0_1 = arith.constant 0 : index
    %c0_2 = arith.constant 0 : index
    %3 = vector.load %arg4[%c0, %c0_1, %c0_2] : memref<2x8x32xf32, #tpu.memory_space<vmem>>, vector<2x8x32xf32>
    %4 = vector.shape_cast %3 : vector<2x8x32xf32> to vector<16x32xf32>
    %c0_3 = arith.constant 0 : index
    %c0_4 = arith.constant 0 : index
    %5 = vector.load %arg2[%c0_3, %c0_4] : memref<32x32xf32, #tpu.memory_space<vmem>>, vector<32x32xf32>
    %cst = arith.constant dense<0.000000e+00> : vector<16x32xf32>
    %6 = tpu.matmul %4, %5, %cst {dimension_numbers = #tpu.dot_dimension_numbers<[1], [0], [0], [1], [0, 0, 1, 1], [], []>} : vector<16x32xf32>, vector<32x32xf32>, vector<16x32xf32> -> vector<16x32xf32>
    %c0_5 = arith.constant 0 : index
    %c0_6 = arith.constant 0 : index
    %7 = vector.load %arg3[%c0_5, %c0_6] : memref<1x32xf32, #tpu.memory_space<vmem>>, vector<1x32xf32>
    %8 = vector.broadcast %7 : vector<1x32xf32> to vector<16x32xf32>
    %9 = arith.addf %6, %8 : vector<16x32xf32>
    %cst_7 = arith.constant dense<0xFF800000> : vector<16xf32>
    %10 = vector.multi_reduction <maximumf>, %9, %cst_7 [1] : vector<16x32xf32> to vector<16xf32>
    %11 = vector.shape_cast %10 : vector<16xf32> to vector<16x1xf32>
    %12 = vector.broadcast %11 : vector<16x1xf32> to vector<16x32xf32>
    %13 = arith.subf %9, %12 : vector<16x32xf32>
    %14 = math.exp %13 : vector<16x32xf32>
    %cst_8 = arith.constant dense<0.000000e+00> : vector<16xf32>
    %15 = vector.multi_reduction <add>, %14, %cst_8 [1] : vector<16x32xf32> to vector<16xf32>
    %16 = vector.shape_cast %15 : vector<16xf32> to vector<16x1xf32>
    %17 = tpu.reciprocal %16 {approx = true} : vector<16x1xf32> -> vector<16x1xf32>
    %18 = arith.mulf %16, %17 : vector<16x1xf32>
    %cst_9 = arith.constant 2.000000e+00 : f32
    %19 = vector.broadcast %cst_9 : f32 to vector<16x1xf32>
    %20 = arith.subf %19, %18 : vector<16x1xf32>
    %21 = arith.mulf %17, %20 : vector<16x1xf32>
    %22 = vector.broadcast %21 : vector<16x1xf32> to vector<16x32xf32>
    %23 = arith.mulf %14, %22 : vector<16x32xf32>
    %24 = vector.shape_cast %23 : vector<16x32xf32> to vector<2x8x32xf32>
    %c0_10 = arith.constant 0 : index
    %c0_11 = arith.constant 0 : index
    %c0_12 = arith.constant 0 : index
    %25 = vector.load %arg6[%c0_10, %c0_11, %c0_12] : memref<2x8x32xf32, #tpu.memory_space<vmem>>, vector<2x8x32xf32>
    tpu.vector_store %arg6[%c0_10, %c0_11, %c0_12], %24 {strides = array<i32>} : memref<2x8x32xf32, #tpu.memory_space<vmem>>, vector<2x8x32xf32>,
    %26 = arith.mulf %16, %21 : vector<16x1xf32>
    %27 = vector.shape_cast %26 : vector<16x1xf32> to vector<2x8x1xf32>
    %c0_13 = arith.constant 0 : index
    %c0_14 = arith.constant 0 : index
    %28 = vector.load %arg7[%c0_13, %c0_14] : memref<2x32xf32, #tpu.memory_space<vmem>>, vector<2x32xf32>
    %29 = vector.broadcast %27 : vector<2x8x1xf32> to vector<2x8x32xf32>
    %30 = arith.mulf %29, %3 : vector<2x8x32xf32>
    %cst_15 = arith.constant dense<0.000000e+00> : vector<2x32xf32>
    %31 = vector.multi_reduction <add>, %30, %cst_15 [1] : vector<2x8x32xf32> to vector<2x32xf32>
    %32 = arith.addf %28, %31 : vector<2x32xf32>
    %c0_16 = arith.constant 0 : index
    %c0_17 = arith.constant 0 : index
    %33 = vector.load %arg7[%c0_16, %c0_17] : memref<2x32xf32, #tpu.memory_space<vmem>>, vector<2x32xf32>
    tpu.vector_store %arg7[%c0_16, %c0_17], %32 {strides = array<i32>} : memref<2x32xf32, #tpu.memory_space<vmem>>, vector<2x32xf32>,
    %c0_i32_18 = arith.constant 0 : i32
    %34 = arith.cmpi eq, %arg1, %c0_i32_18 : i32
    %35 = arith.extui %34 : i1 to i32
    %c0_i32_19 = arith.constant 0 : i32
    %36 = arith.cmpi ne, %35, %c0_i32_19 : i32
    scf.if %36 {
      %c0_20 = arith.constant 0 : index
      %c0_21 = arith.constant 0 : index
      %37 = vector.load %arg7[%c0_20, %c0_21] : memref<2x32xf32, #tpu.memory_space<vmem>>, vector<2x32xf32>
      %c0_22 = arith.constant 0 : index
      %c0_23 = arith.constant 0 : index
      %38 = vector.load %arg5[%c0_22, %c0_23] : memref<2x32xf32, #tpu.memory_space<vmem>>, vector<2x32xf32>
      tpu.vector_store %arg5[%c0_22, %c0_23], %37 {strides = array<i32>} : memref<2x32xf32, #tpu.memory_space<vmem>>, vector<2x32xf32>,
    } else {
    }
    return
  }
  func.func @transform_0(%arg0: i32, %arg1: i32) -> (i32, i32) {
    %c0_i32 = arith.constant 0 : i32
    %c0_i32_0 = arith.constant 0 : i32
    %c0_i32_1 = arith.constant 0 : i32
    return %c0_i32, %c0_i32_0 : i32, i32
  }
  func.func @transform_1(%arg0: i32, %arg1: i32) -> (i32, i32) {
    %c0_i32 = arith.constant 0 : i32
    %c0_i32_0 = arith.constant 0 : i32
    %c0_i32_1 = arith.constant 0 : i32
    return %c0_i32, %c0_i32_0 : i32, i32
  }
  func.func @transform_2(%arg0: i32, %arg1: i32) -> (i32, i32, i32) {
    %c0_i32 = arith.constant 0 : i32
    %c0_i32_0 = arith.constant 0 : i32
    return %arg0, %arg1, %c0_i32 : i32, i32, i32
  }
  func.func @transform_3(%arg0: i32, %arg1: i32) -> (i32, i32) {
    %c0_i32 = arith.constant 0 : i32
    %c0_i32_0 = arith.constant 0 : i32
    return %arg0, %c0_i32 : i32, i32
  }
  func.func @transform_4(%arg0: i32, %arg1: i32) -> (i32, i32, i32) {
    %c0_i32 = arith.constant 0 : i32
    %c0_i32_0 = arith.constant 0 : i32
    return %arg0, %arg1, %c0_i32 : i32, i32, i32
  }
}

</mosaic_0001>

<bundles_post_ra>
// kernel: tpu_custom_call.1
= control target key start
LH: loop header
LB: loop body
LE: loop exit
PB: predicated region body
PF: predicated region fallthrough
CT: control target
= control target key end

     0   :  { %10 = vsyncpa [#allocation4], 0  ;;  %s485_s0 = inlined_call_operand.hbm [shape: f32[32,32], index: 0, kind: input, shape index: {}]   ;;  %s486_s1 = inlined_call_operand.vmem [shape: f32[1,32], index: 1, kind: input, shape index: {}]   ;;  %s487_s2 = inlined_call_operand.hbm [shape: f32[2,8,32], index: 2, kind: input, shape index: {}]   ;;  %s488_s3 = inlined_call_operand.hbm [shape: f32[2,32], index: 3, kind: output, shape index: {0}]   ;;  %s489_s4 = inlined_call_operand.hbm [shape: f32[2,8,32], index: 4, kind: output, shape index: {1}]  }
   0x1   :  { %11 = vsyncpa [#allocation7], 0 }
   0x2   :  { %12 = vsyncpa [#allocation5], 0 }
   0x3   :  { %13 = vsyncpa [#allocation10], 0  ;;  %s380_s15 = smov [#allocation3]   ;;  %s284_s19 = scalar_lea.hbm %s485_s0, 512 }
   0x4   :  { %s19_s16 = sshll.u32 %s380_s15, 4  ;;  %p285_p0 = scmp.ne.s32.totalorder %s485_s0, %s284_s19  ;;  %s20_s16 = int_to_ptr.vmem [resolvable:$true] %s19_s16 }
   0x5   :  { %p288_p1 = scmp.lt.u32.totalorder %s284_s19, %s485_s0 }
   0x7   :  { %p290_p2 = pnand %p288_p1, %p285_p0 }
   0x9   :  { %293 = shalt.err (!%p290_p2)
}
   0xa   :  { %s294_s24 = scalar_lea.vmem %s20_s16, 512  ;;  %p299_p4 = scmp.lt.s32.totalorder %s20_s16, %s20_s16 }
   0xb   :  { %p295_p3 = scmp.ne.s32.totalorder %s20_s16, %s294_s24  ;;  %p300_p5 = scmp.lt.s32.totalorder %s294_s24, %s294_s24 }
   0xd   :  { %p301_p6 = por %p300_p5, %p299_p4 }
   0xf   :  { %p302_p7 = pnand %p301_p6, %p295_p3 }
  0x11   :  { %305 = shalt.err (!%p302_p7)
}
  0x12   :  { %s381_s25 = smov 128   ;;  %s382_s26 = smov 8  }
  0x13   :  { %25 = dma.hbm_to_vmem [thread:$0]  %s485_s0, 512, %s20_s16, [#allocation4], %s381_s25, %s381_s25, %s382_s26  }
  0x14   :  { %s383_s29 = smov [#allocation6]   ;;  %s306_s7 = scalar_lea.hbm %s487_s2, 256 }
  0x15   :  { %s33_s30 = sshll.u32 %s383_s29, 4  ;;  %p307_p8 = scmp.ne.s32.totalorder %s487_s2, %s306_s7  ;;  %s34_s30 = int_to_ptr.vmem [resolvable:$true] %s33_s30 }
  0x16   :  { %p310_p9 = scmp.lt.u32.totalorder %s306_s7, %s487_s2 }
  0x18   :  { %p312_p10 = pnand %p310_p9, %p307_p8 }
  0x1a   :  { %315 = shalt.err (!%p312_p10)
}
  0x1b   :  { %s316_s12 = scalar_lea.vmem %s34_s30, 256  ;;  %p321_p12 = scmp.lt.s32.totalorder %s34_s30, %s34_s30 }
  0x1c   :  { %p317_p11 = scmp.ne.s32.totalorder %s34_s30, %s316_s12  ;;  %p322_p13 = scmp.lt.s32.totalorder %s316_s12, %s316_s12 }
  0x1e   :  { %p323_p0 = por %p322_p13, %p321_p12 }
  0x20   :  { %p324_p1 = pnand %p323_p0, %p317_p11 }
  0x22   :  { %327 = shalt.err (!%p324_p1)
}
  0x23   :  { %39 = dma.hbm_to_vmem [thread:$0]  %s487_s2, 256, %s34_s30, [#allocation7], %s381_s25, %s381_s25, %s382_s26  }
  0x24   :  { %372 = dma.done.wait [#allocation4], 512  }
  0x25   :  { %373 = vsyncadd [#allocation4], 4294966784 }
  0x26   :  { %374 = dma.done.wait [#allocation7], 256  }
  0x27   :  { %375 = vsyncadd [#allocation7], 4294967040  ;;  %vm65_vm0 = vcmask 261120   ;;  %v54_v0 = vld [vmem:[#allocation3] sm:$0xff]  ;;  %v55_v1 = vld [vmem:[#allocation3 + $0x8] sm:$0xff]  ;;  %vm50_vm1 = vcmask 254976  }
  0x28   :  { %v56_v2 = vld [vmem:[#allocation3 + $0x10] sm:$0xff]  ;;  %v261_v3 = vpack.c.bf16 %v55_v1, %v54_v0  ;;  %v57_v4 = vld [vmem:[#allocation3 + $0x18] sm:$0xff]  ;;  %v52_v5 = vld [vmem:[#allocation6] sm:$0xff]  ;;  %v384_v25 = vmov 0.0  }
  0x29   :  { %v265_v6 = vpack.c.bf16 %v57_v4, %v56_v2  ;;  %258 = vmatprep.mubr.msk.f32.mxu0 %vm65_vm0, %v52_v5  ;;  %v53_v7 = vld [vmem:[#allocation6 + $0x8] sm:$0xff]  ;;  %v241_v8 = vld [vmem:[%s486_s1] ss:$0 sm:$0xff]  ;;  %51 = vst.msk [vmem:[#allocation2] sm:$0x3] %vm50_vm1, %v384_v25  ;;  %s385_s1 = smov [#allocation9]  }
  0x2a   :  { %262 = vmatprep.subr.bf16.mxu0 %v261_v3  ;;  %s224_s15 = sshll.u32 %s385_s1, 4  ;;  %s225_s15 = int_to_ptr.vmem [resolvable:$true] %s224_s15 }
  0x2b   :  { %264 = vmatpush3.bf16.msra.mxu0 %v261_v3  ;;  %s328_s16 = scalar_lea.vmem %s225_s15, 256  ;;  %p333_p3 = scmp.lt.s32.totalorder %s225_s15, %s225_s15 }
  0x2c   :  { %266 = vmatprep.subr.bf16.mxu0 %v265_v6  ;;  %p329_p2 = scmp.ne.s32.totalorder %s225_s15, %s328_s16  ;;  %p334_p4 = scmp.lt.s32.totalorder %s328_s16, %s328_s16 }
  0x2e   :  { %p335_p5 = por %p334_p4, %p333_p3 }
  0x2f   :  { %268 = vmatpush3.bf16.msra.mxu0 %v265_v6 }
  0x30   :  { %p336_p6 = pnand %p335_p5, %p329_p2 }
  0x32   :  { %259 = vmatmul.mubr.msk.f32.vlgmr.msra.gmra.mrb[0].mxu0 %vm65_vm0, %v53_v7 }
 0x105   :  { %v260_v9 = vpop.f32.mrb[0].mxu0 }
 0x106   :  { %v138_v10 = vpop.f32.mrb[1].mxu0  ;;  %v144_v12 = vadd.f32 %v260_v9, %v241_v8 }
 0x107   :  { %v139_v11 = vadd.f32 %v241_v8, %v138_v10 }
 0x108   :  { %v150_v14 = vsel %vm65_vm0, %v144_v12, -inf }
 0x109   :  { %v147_v13 = vsel %vm65_vm0, %v139_v11, -inf }
 0x10a   :  { %148 = vmax.xlane.f32.xlu0 %v147_v13 }
 0x10e   :  { %151 = vmax.xlane.f32.xlu0 %v150_v14 }
 0x197   :  { %v149_v15 = vpop.xlane.xlu0 %148 }
 0x198   :  { %v153_v16 = vsub.f32 %v139_v11, %v149_v15 }
 0x19a   :  { %v155_v17 = vmul.f32 1.442695, %v153_v16 }
 0x19b   :  { %v152_v18 = vpop.xlane.xlu0 %151 }
 0x19c   :  { %276 = vpow2.f32 %v155_v17  ;;  %v154_v19 = vsub.f32 %v144_v12, %v152_v18 }
 0x19e   :  { %v157_v20 = vmul.f32 1.442695, %v154_v19 }
 0x1a0   :  { %278 = vpow2.f32 %v157_v20 }
 0x1a6   :  { %v277_v21 = vpop.eup %276 }
 0x1a7   :  { %v159_v22 = vsel %vm65_vm0, %v277_v21, 0.0 }
 0x1a8   :  { %160 = vadd.xlane.f32.xlu1 %v159_v22 }
 0x1aa   :  { %v279_v23 = vpop.eup %278 }
 0x1ab   :  { %v162_v24 = vsel %vm65_vm0, %v279_v23, 0.0 }
 0x1ac   :  { %163 = vadd.xlane.f32.xlu1 %v162_v24 }
 0x235   :  { %v161_v26 = vpop.xlane.xlu1 %160 }
 0x236   :  { %280 = vrcp.f32 %v161_v26 }
 0x239   :  { %v164_v27 = vpop.xlane.xlu1 %163 }
 0x23a   :  { %282 = vrcp.f32 %v164_v27 }
 0x240   :  { %v281_v28 = vpop.eup %280 }
 0x241   :  { %v167_v29 = vmul.f32 %v281_v28, %v161_v26 }
 0x243   :  { %v169_v30 = vsub.f32 2.0, %v167_v29 }
 0x244   :  { %v283_v31 = vpop.eup %282 }
 0x245   :  { %v171_v32 = vmul.f32 %v281_v28, %v169_v30  ;;  %v168_v33 = vmul.f32 %v283_v31, %v164_v27 }
 0x247   :  { %v173_v34 = vmul.f32 %v277_v21, %v171_v32  ;;  %v177_v35 = vmul.f32 %v171_v32, %v161_v26  ;;  %v170_v36 = vsub.f32 2.0, %v168_v33 }
 0x249   :  { %v180_v37 = vmul.f32 %v177_v35, %v52_v5  ;;  %175 = vst.msk [vmem:[#allocation9] sm:$0xff] %vm65_vm0, %v173_v34  ;;  %v172_v38 = vmul.f32 %v283_v31, %v170_v36 }
 0x24b   :  { %v182_v39 = vsel %vm65_vm0, %v180_v37, 0.0  ;;  %v174_v40 = vmul.f32 %v279_v23, %v172_v38  ;;  %v178_v41 = vmul.f32 %v172_v38, %v164_v27 }
 0x24c   :  { %v183_v42 = vrot.slane %v182_v39, 4 }
 0x24d   :  { %v181_v43 = vmul.f32 %v178_v41, %v53_v7  ;;  %176 = vst.msk [vmem:[#allocation9 + $0x8] sm:$0xff] %vm65_vm0, %v174_v40 }
 0x24e   :  { %v184_v44 = vadd.f32 %v183_v42, %v182_v39 }
 0x24f   :  { %339 = shalt.err (!%p336_p6)
}
 0x250   :  { %s340_s19 = scalar_lea.hbm %s489_s4, 256 }
 0x251   :  { %p341_p7 = scmp.ne.s32.totalorder %s489_s4, %s340_s19  ;;  %p344_p8 = scmp.lt.u32.totalorder %s340_s19, %s489_s4 }
 0x253   :  { %p346_p9 = pnand %p344_p8, %p341_p7 }
 0x255   :  { %349 = shalt.err (!%p346_p9)
}
 0x256   :  { %230 = dma.vmem_to_hbm [thread:$0]  %s225_s15, 256, %s489_s4, [#allocation10], %s381_s25, %s381_s25, %s382_s26   ;;  %v189_v45 = vsel %vm65_vm0, %v181_v43, 0.0  ;;  %v185_v46 = vrot.slane %v184_v44, 2  ;;  %vm198_vm2 = vcmask 1041409  }
 0x257   :  { %v190_v47 = vrot.slane %v189_v45, 4  ;;  %v179_v56 = vld [vmem:[#allocation2] sm:$0x3]  ;;  %s386_s28 = smov [#allocation8]  }
 0x258   :  { %v186_v48 = vadd.f32 %v185_v46, %v184_v44  ;;  %s215_s4 = sshll.u32 %s386_s28, 4  ;;  %s216_s4 = int_to_ptr.vmem [resolvable:$true] %s215_s4 }
 0x259   :  { %v191_v49 = vadd.f32 %v190_v47, %v189_v45  ;;  %s350_s25 = scalar_lea.vmem %s216_s4, 32  ;;  %p355_p11 = scmp.lt.s32.totalorder %s216_s4, %s216_s4 }
 0x25a   :  { %v187_v51 = vrot.slane %v186_v48, 1  ;;  %p351_p10 = scmp.ne.s32.totalorder %s216_s4, %s350_s25  ;;  %p356_p12 = scmp.lt.s32.totalorder %s350_s25, %s350_s25 }
 0x25b   :  { %v192_v50 = vrot.slane %v191_v49, 2 }
 0x25c   :  { %v188_v54 = vadd.f32 %v187_v51, %v186_v48  ;;  %p357_p13 = por %p356_p12, %p355_p11 }
 0x25d   :  { %v193_v52 = vadd.f32 %v192_v50, %v191_v49 }
 0x25e   :  { %p358_p0 = pnand %p357_p13, %p351_p10 }
 0x25f   :  { %v194_v53 = vrot.slane %v193_v52, 1 }
 0x261   :  { %v195_v55 = vadd.f32 %v194_v53, %v193_v52 }
 0x263   :  { %v199_v57 = vsel %vm198_vm2, %v195_v55, %v188_v54 }
 0x264   :  { %v201_v58 = vadd.f32 %v199_v57, %v179_v56 }
 0x266   :  { %203 = vst.msk [vmem:[#allocation2] sm:$0x3] %vm50_vm1, %v201_v58 }
 0x26d   :  { %v207_v59 = vld [vmem:[#allocation2] sm:$0x3] }
 0x26e   :  { %208 = vst.msk [vmem:[#allocation8] sm:$0x3] %vm50_vm1, %v207_v59 }
 0x26f   :  { %361 = shalt.err (!%p358_p0)
}
 0x270   :  { %s362_s30 = scalar_lea.hbm %s488_s3, 32 }
 0x271   :  { %p363_p1 = scmp.ne.s32.totalorder %s488_s3, %s362_s30  ;;  %p366_p2 = scmp.lt.u32.totalorder %s362_s30, %s488_s3 }
 0x273   :  { %p368_p3 = pnand %p366_p2, %p363_p1 }
 0x275   :  { %371 = shalt.err (!%p368_p3)
}
 0x276   :  { %218 = dma.vmem_to_hbm [thread:$0]  %s216_s4, 32, %s488_s3, [#allocation5]  }
 0x277   :  { %376 = dma.done.wait [#allocation5], 32  }
 0x278   :  { %377 = vsyncadd [#allocation5], 4294967264 }
 0x279   :  { %378 = dma.done.wait [#allocation10], 256  }
 0x27a   :  { %379 = vsyncadd [#allocation10], 4294967040 }
 0x27b   :  { %237 = vsyncpa [#allocation4], 1 }
 0x27c   :  { %238 = vsyncpa [#allocation7], 1 }
 0x27d   :  { %239 = vsyncpa [#allocation5], 1 }
 0x27e   :  { %240 = vsyncpa [#allocation10], 1 }

</bundles_post_ra>
